<compile_context>
chip_gen: v7x
topology: tpu7x:2x2x1
jax: 0.10.0
libtpu: 0.0.40
codegen_flags: <defaults>
</compile_context>

<pallas_src>
import jax
import jax.numpy as jnp
from jax.experimental import pallas as pl
from jax.experimental.pallas import tpu as pltpu


_ROW_ALIGN = 16   # safe for bf16 (16,128) and f32 (8,128) tiling
_LANE = 128


def _round_up(x, m):
    return ((x + m - 1) // m) * m


# ----------------------------------------------------------------------------
# Pallas kernel: fused 3-layer MLP  (fc1 -> ReLU -> fc2 -> ReLU -> fc_logits)
# ----------------------------------------------------------------------------
def _mlp_kernel(x_ref, w1_ref, b1_ref, w2_ref, b2_ref, w3_ref, b3_ref, o_ref):
    # x arrives fp32; cast to bf16 after load (MXU-native LHS, no wrapper pass).
    x = x_ref[...].astype(jnp.bfloat16)
    h = jnp.dot(x, w1_ref[...], preferred_element_type=jnp.float32)
    h = jnp.maximum(h + b1_ref[...], 0.0).astype(jnp.bfloat16)
    h = jnp.dot(h, w2_ref[...], preferred_element_type=jnp.float32)
    h = jnp.maximum(h + b2_ref[...], 0.0).astype(jnp.bfloat16)
    out = jnp.dot(h, w3_ref[...], preferred_element_type=jnp.float32) + b3_ref[...]
    o_ref[...] = out.astype(o_ref.dtype)


def mlp_head_pallas(x, w1, b1, w2, b2, w3, b3, *, tile_m=1024):
    """Fused recognition MLP over rows of x ([N, C] fp32) -> [N, NCpad] fp32.

    Kernel-ready parameters:
      w1 [C,H], w2 [H,H], w3 [H,NCpad] in bf16 (resident in VMEM),
      b1 [1,H], b2 [1,H], b3 [1,NCpad] in fp32,
      NCpad a multiple of 128 (lane-dense, unmasked stores); the real classes
      are sliced out by the caller, fused with its reshape.
    """
    n, c = x.shape
    h = w1.shape[1]
    nc_pad = w3.shape[1]

    if n <= tile_m:
        # Single full-extent block: no row padding, no grid splitting needed
        # (best on single-TC v5e/v6e; small work anyway on v7x).
        tm = n
    else:
        tm = _round_up(tile_m, _ROW_ALIGN)
    grid = (pl.cdiv(n, tm),)   # ragged last block: OOB reads unused, writes masked

    flops = 2 * n * (c * h + h * h + h * nc_pad)
    bytes_accessed = (n * c * 4 + n * nc_pad * 4
                      + 2 * (c * h + h * h + h * nc_pad)
                      + 4 * (2 * h + nc_pad))

    return pl.pallas_call(
        _mlp_kernel,
        out_shape=jax.ShapeDtypeStruct((n, nc_pad), jnp.float32),
        grid_spec=pltpu.PrefetchScalarGridSpec(
            num_scalar_prefetch=0,
            grid=grid,
            in_specs=[
                pl.BlockSpec((tm, c), lambda i: (i, 0)),       # x rows (fp32)
                # Grid-invariant params: constant index_map -> DMA'd once,
                # resident in VMEM across all row tiles.
                pl.BlockSpec((c, h), lambda i: (0, 0)),        # W1 (bf16)
                pl.BlockSpec((1, h), lambda i: (0, 0)),        # b1 (fp32)
                pl.BlockSpec((h, h), lambda i: (0, 0)),        # W2 (bf16)
                pl.BlockSpec((1, h), lambda i: (0, 0)),        # b2 (fp32)
                pl.BlockSpec((h, nc_pad), lambda i: (0, 0)),   # W3 (bf16, lane padded)
                pl.BlockSpec((1, nc_pad), lambda i: (0, 0)),   # b3 (fp32, lane padded)
            ],
            out_specs=pl.BlockSpec((tm, nc_pad), lambda i: (i, 0)),
        ),
        compiler_params=pltpu.CompilerParams(
            dimension_semantics=("parallel",),
        ),
        cost_estimate=pl.CostEstimate(
            flops=flops, transcendentals=0, bytes_accessed=bytes_accessed),
    )(x, w1, b1, w2, b2, w3, b3)


# ----------------------------------------------------------------------------
# MultiRecogSeqHead (forward only)
# ----------------------------------------------------------------------------
class MultiRecogSeqHead:
    def __init__(
        self,
        in_channels=256,
        fc_out_channels=512,
        text_max_length=25,
        featmap_indices=(0, 1, 2, 3),
        num_fcs=2,
        num_classes=38,
        seed=0,
        tile_m=1024,
    ):
        assert num_fcs == 2, "kernel is fused for the default num_fcs=2"
        self.in_channels = in_channels
        self.fc_out_channels = fc_out_channels
        self.text_max_length = text_max_length
        self.featmap_indices = featmap_indices
        self.num_fcs = num_fcs
        self.num_classes = num_classes
        self.tile_m = tile_m

        # Deterministic parameter init (xavier-uniform weights, zero biases).
        key = jax.random.PRNGKey(seed)
        k1, k2, k3 = jax.random.split(key, 3)

        def xavier(k, fan_in, fan_out):
            limit = (6.0 / (fan_in + fan_out)) ** 0.5
            return jax.random.uniform(
                k, (fan_in, fan_out), jnp.float32, -limit, limit
            )

        # fp32 "master" parameters (mirror the PyTorch module; layout [in, out]
        # so x @ W + b == PyTorch x @ W.T + b with W: [out, in]).
        self.w1 = xavier(k1, in_channels, fc_out_channels)
        self.b1 = jnp.zeros((1, fc_out_channels), jnp.float32)
        self.w2 = xavier(k2, fc_out_channels, fc_out_channels)
        self.b2 = jnp.zeros((1, fc_out_channels), jnp.float32)
        self.w3 = xavier(k3, fc_out_channels, num_classes)
        self.b3 = jnp.zeros((1, num_classes), jnp.float32)

        # Kernel-ready copies (built once, not per forward): bf16 weights for
        # MXU-rate matmuls; fc_logits padded to a lane-dense (x128) width.
        self.nc_pad = _round_up(num_classes, _LANE)
        pad_c = self.nc_pad - num_classes
        self.w1_k = self.w1.astype(jnp.bfloat16)
        self.w2_k = self.w2.astype(jnp.bfloat16)
        self.w3_k = jnp.pad(self.w3, ((0, 0), (0, pad_c))).astype(jnp.bfloat16)
        self.b3_k = jnp.pad(self.b3, ((0, 0), (0, pad_c)))

    def _run_mlp(self, x_rows):
        return mlp_head_pallas(
            x_rows,
            self.w1_k, self.b1, self.w2_k, self.b2, self.w3_k, self.b3_k,
            tile_m=self.tile_m,
        )

    def forward_single(self, feats, matched_bboxes):
        """Single-level path (API parity with the PyTorch module).

        Accepts feats as [BKL, C] (as in the original) or any [..., C]."""
        max_category_num = int(
            jnp.max(jnp.sum((matched_bboxes >= 1).astype(jnp.int32), axis=1))
        )
        if max_category_num < 1:
            return None
        batch = matched_bboxes.shape[0]
        x = feats.reshape(-1, feats.shape[-1])
        logits = self._run_mlp(x)
        return logits[:, :self.num_classes].reshape(
            batch, max_category_num, self.text_max_length, self.num_classes
        )

    def forward(self, feats, matched_bboxes):
        """Multi-level path: one pallas_call per level (no concat / pad / cast
        passes over the activations); the host sync for K is issued after the
        kernels are dispatched so it overlaps with kernel execution."""
        n_levels = len(self.featmap_indices)
        assert len(feats) == n_levels and len(matched_bboxes) == n_levels

        # Per-level K on device (async); only the None-vs-shape decision needs
        # it on the host, so compute it first but fetch it last.
        k_dev = jnp.stack(
            [jnp.max(jnp.sum((mb >= 1).astype(jnp.int32), axis=1))
             for mb in matched_bboxes]
        )

        # Dispatch all kernels (they do not depend on K).
        flat = [f.reshape(-1, f.shape[-1]) for f in feats]
        logits = [self._run_mlp(x) if x.shape[0] > 0 else None for x in flat]

        # Single host sync, overlapped with the kernels above.
        ks = [int(v) for v in jax.device_get(k_dev)]

        preds = []
        for i in range(n_levels):
            if ks[i] < 1 or logits[i] is None:
                preds.append(None)
                continue
            batch = matched_bboxes[i].shape[0]
            rows = flat[i].shape[0]
            assert rows == batch * ks[i] * self.text_max_length
            # Class-slice fused with the per-level reshape: output touched once.
            preds.append(
                logits[i][:, :self.num_classes].reshape(
                    batch, ks[i], self.text_max_length, self.num_classes
                )
            )
        return preds

    # TODO(synk): get_target / loss / accuracy_metric / get_pred_text are
    # host-side, converter-dependent utilities (string encode/decode); not
    # implemented as kernels.


# ----------------------------------------------------------------------------
# Pure-JAX reference (same bf16-input / fp32-accumulate numerics as the kernel)
# ----------------------------------------------------------------------------
def _ref_mlp_bf16(x, w1, b1, w2, b2, w3, b3):
    bf = jnp.bfloat16
    h = jnp.dot(x.astype(bf), w1.astype(bf), preferred_element_type=jnp.float32) + b1
    h = jnp.maximum(h, 0.0)
    h = jnp.dot(h.astype(bf), w2.astype(bf), preferred_element_type=jnp.float32) + b2
    h = jnp.maximum(h, 0.0)
    return jnp.dot(h.astype(bf), w3.astype(bf), preferred_element_type=jnp.float32) + b3


if __name__ == "__main__":
    # Small synthetic shapes consistent with the module's forward:
    #   B=2 images, L=8 max text length, C=32 input channels, H=64 fc hidden,
    #   num_classes=38 (exercises the 128-lane output padding),
    #   S^2=64 grid cells, 2 feature levels with K=(4, 3) text instances.
    # tile_m=32 is deliberately small so the grid / ragged-last-block path is
    # exercised (level 1 has 48 rows -> cdiv(48, 32) = 2 tiles, last partial).
    B, L = 2, 8
    C, H, NC = 32, 64, 38
    S2 = 64
    ks_true = (4, 3)
    n_levels = len(ks_true)

    head = MultiRecogSeqHead(
        in_channels=C,
        fc_out_channels=H,
        text_max_length=L,
        featmap_indices=tuple(range(n_levels)),
        num_fcs=2,
        num_classes=NC,
        seed=0,
        tile_m=32,
    )

    key = jax.random.PRNGKey(0)
    feats, bboxes = [], []
    for lvl, k_lvl in enumerate(ks_true):
        key, kf, kb = jax.random.split(key, 3)
        # feats[i]: [B, K, L, C] instance features (forward flattens to [BKL, C]).
        feats.append(jax.random.normal(kf, (B, k_lvl, L, C), jnp.float32))
        # matched_bboxes: exactly K grid cells per image have category >= 1,
        # so max_category_num == K and the final reshape is consistent.
        mb = jnp.zeros((B, S2), jnp.int32)
        cols = jax.random.permutation(kb, S2)[:k_lvl]
        for b in range(B):
            mb = mb.at[b, cols].set(jnp.arange(1, k_lvl + 1, dtype=jnp.int32))
        bboxes.append(mb)

    preds = head.forward(feats, bboxes)
    for p in preds:
        if p is not None:
            jax.block_until_ready(p)

    # Verify against a pure-JAX reference with the same mixed-precision scheme.
    for lvl, k_lvl in enumerate(ks_true):
        ref = _ref_mlp_bf16(
            feats[lvl].reshape(-1, C),
            head.w1, head.b1, head.w2, head.b2, head.w3, head.b3,
        ).reshape(B, k_lvl, L, NC)
        assert preds[lvl] is not None
        assert preds[lvl].shape == (B, k_lvl, L, NC), preds[lvl].shape
        assert jnp.allclose(preds[lvl], ref, atol=1e-2, rtol=1e-2), (
            f"mismatch at level {lvl}"
        )

    # forward_single path (original [BKL, C] input layout).
    p0 = head.forward_single(feats[0].reshape(-1, C), bboxes[0])
    jax.block_until_ready(p0)
    assert p0.shape == (B, ks_true[0], L, NC)
    assert jnp.allclose(p0, preds[0], atol=1e-5, rtol=1e-5)

    print("KERNEL_OK")
</pallas_src>

<mosaic_0001>
module attributes {stable_mosaic.version = 11 : i64} {
  func.func @_mlp_kernel(%arg0: i32, %arg1: memref<32x32xf32, #tpu.memory_space<vmem>>, %arg2: memref<32x64xbf16, #tpu.memory_space<vmem>>, %arg3: memref<1x64xf32, #tpu.memory_space<vmem>>, %arg4: memref<64x64xbf16, #tpu.memory_space<vmem>>, %arg5: memref<1x64xf32, #tpu.memory_space<vmem>>, %arg6: memref<64x128xbf16, #tpu.memory_space<vmem>>, %arg7: memref<1x128xf32, #tpu.memory_space<vmem>>, %arg8: memref<32x128xf32, #tpu.memory_space<vmem>>) attributes {dimension_semantics = [#tpu.dimension_semantics<parallel>], iteration_bounds = array<i64: 2>, scalar_prefetch = 0 : i64, scratch_operands = 0 : i64, tpu.core_type = #tpu.core_type<tc>, window_params = [{transform_indices = @transform_0, window_bounds = array<i64: 32, 32>}, {pipeline_mode = #tpu.pipeline_mode<synchronous>, transform_indices = @transform_1, window_bounds = array<i64: 32, 64>}, {pipeline_mode = #tpu.pipeline_mode<synchronous>, transform_indices = @transform_2, window_bounds = array<i64: 1, 64>}, {pipeline_mode = #tpu.pipeline_mode<synchronous>, transform_indices = @transform_3, window_bounds = array<i64: 64, 64>}, {pipeline_mode = #tpu.pipeline_mode<synchronous>, transform_indices = @transform_4, window_bounds = array<i64: 1, 64>}, {pipeline_mode = #tpu.pipeline_mode<synchronous>, transform_indices = @transform_5, window_bounds = array<i64: 64, 128>}, {pipeline_mode = #tpu.pipeline_mode<synchronous>, transform_indices = @transform_6, window_bounds = array<i64: 1, 128>}, {transform_indices = @transform_7, window_bounds = array<i64: 32, 128>}]} {
    %c0 = arith.constant 0 : index
    %c0_0 = arith.constant 0 : index
    %0 = vector.load %arg1[%c0, %c0_0] : memref<32x32xf32, #tpu.memory_space<vmem>>, vector<32x32xf32>
    %1 = arith.truncf %0 : vector<32x32xf32> to vector<32x32xbf16>
    %c0_1 = arith.constant 0 : index
    %c0_2 = arith.constant 0 : index
    %2 = vector.load %arg2[%c0_1, %c0_2] : memref<32x64xbf16, #tpu.memory_space<vmem>>, vector<32x64xbf16>
    %cst = arith.constant dense<0.000000e+00> : vector<32x64xf32>
    %3 = tpu.matmul %1, %2, %cst {dimension_numbers = #tpu.dot_dimension_numbers<[1], [0], [0], [1], [0, 0, 1, 1], [], []>} : vector<32x32xbf16>, vector<32x64xbf16>, vector<32x64xf32> -> vector<32x64xf32>
    %c0_3 = arith.constant 0 : index
    %c0_4 = arith.constant 0 : index
    %4 = vector.load %arg3[%c0_3, %c0_4] : memref<1x64xf32, #tpu.memory_space<vmem>>, vector<1x64xf32>
    %5 = vector.broadcast %4 : vector<1x64xf32> to vector<32x64xf32>
    %6 = arith.addf %3, %5 : vector<32x64xf32>
    %cst_5 = arith.constant 0.000000e+00 : f32
    %7 = vector.broadcast %cst_5 : f32 to vector<32x64xf32>
    %8 = arith.maximumf %6, %7 : vector<32x64xf32>
    %9 = arith.truncf %8 : vector<32x64xf32> to vector<32x64xbf16>
    %c0_6 = arith.constant 0 : index
    %c0_7 = arith.constant 0 : index
    %10 = vector.load %arg4[%c0_6, %c0_7] : memref<64x64xbf16, #tpu.memory_space<vmem>>, vector<64x64xbf16>
    %cst_8 = arith.constant dense<0.000000e+00> : vector<32x64xf32>
    %11 = tpu.matmul %9, %10, %cst_8 {dimension_numbers = #tpu.dot_dimension_numbers<[1], [0], [0], [1], [0, 0, 1, 1], [], []>} : vector<32x64xbf16>, vector<64x64xbf16>, vector<32x64xf32> -> vector<32x64xf32>
    %c0_9 = arith.constant 0 : index
    %c0_10 = arith.constant 0 : index
    %12 = vector.load %arg5[%c0_9, %c0_10] : memref<1x64xf32, #tpu.memory_space<vmem>>, vector<1x64xf32>
    %13 = vector.broadcast %12 : vector<1x64xf32> to vector<32x64xf32>
    %14 = arith.addf %11, %13 : vector<32x64xf32>
    %cst_11 = arith.constant 0.000000e+00 : f32
    %15 = vector.broadcast %cst_11 : f32 to vector<32x64xf32>
    %16 = arith.maximumf %14, %15 : vector<32x64xf32>
    %17 = arith.truncf %16 : vector<32x64xf32> to vector<32x64xbf16>
    %c0_12 = arith.constant 0 : index
    %c0_13 = arith.constant 0 : index
    %18 = vector.load %arg6[%c0_12, %c0_13] : memref<64x128xbf16, #tpu.memory_space<vmem>>, vector<64x128xbf16>
    %cst_14 = arith.constant dense<0.000000e+00> : vector<32x128xf32>
    %19 = tpu.matmul %17, %18, %cst_14 {dimension_numbers = #tpu.dot_dimension_numbers<[1], [0], [0], [1], [0, 0, 1, 1], [], []>} : vector<32x64xbf16>, vector<64x128xbf16>, vector<32x128xf32> -> vector<32x128xf32>
    %c0_15 = arith.constant 0 : index
    %c0_16 = arith.constant 0 : index
    %20 = vector.load %arg7[%c0_15, %c0_16] : memref<1x128xf32, #tpu.memory_space<vmem>>, vector<1x128xf32>
    %21 = vector.broadcast %20 : vector<1x128xf32> to vector<32x128xf32>
    %22 = arith.addf %19, %21 : vector<32x128xf32>
    %c0_17 = arith.constant 0 : index
    %c0_18 = arith.constant 0 : index
    %23 = vector.load %arg8[%c0_17, %c0_18] : memref<32x128xf32, #tpu.memory_space<vmem>>, vector<32x128xf32>
    tpu.vector_store %arg8[%c0_17, %c0_18], %22 {strides = array<i32>} : memref<32x128xf32, #tpu.memory_space<vmem>>, vector<32x128xf32>,
    return
  }
  func.func @transform_0(%arg0: i32) -> (i32, i32) {
    %c0_i32 = arith.constant 0 : i32
    %c0_i32_0 = arith.constant 0 : i32
    return %arg0, %c0_i32 : i32, i32
  }
  func.func @transform_1(%arg0: i32) -> (i32, i32) {
    %c0_i32 = arith.constant 0 : i32
    %c0_i32_0 = arith.constant 0 : i32
    %c0_i32_1 = arith.constant 0 : i32
    return %c0_i32, %c0_i32_0 : i32, i32
  }
  func.func @transform_2(%arg0: i32) -> (i32, i32) {
    %c0_i32 = arith.constant 0 : i32
    %c0_i32_0 = arith.constant 0 : i32
    %c0_i32_1 = arith.constant 0 : i32
    return %c0_i32, %c0_i32_0 : i32, i32
  }
  func.func @transform_3(%arg0: i32) -> (i32, i32) {
    %c0_i32 = arith.constant 0 : i32
    %c0_i32_0 = arith.constant 0 : i32
    %c0_i32_1 = arith.constant 0 : i32
    return %c0_i32, %c0_i32_0 : i32, i32
  }
  func.func @transform_4(%arg0: i32) -> (i32, i32) {
    %c0_i32 = arith.constant 0 : i32
    %c0_i32_0 = arith.constant 0 : i32
    %c0_i32_1 = arith.constant 0 : i32
    return %c0_i32, %c0_i32_0 : i32, i32
  }
  func.func @transform_5(%arg0: i32) -> (i32, i32) {
    %c0_i32 = arith.constant 0 : i32
    %c0_i32_0 = arith.constant 0 : i32
    %c0_i32_1 = arith.constant 0 : i32
    return %c0_i32, %c0_i32_0 : i32, i32
  }
  func.func @transform_6(%arg0: i32) -> (i32, i32) {
    %c0_i32 = arith.constant 0 : i32
    %c0_i32_0 = arith.constant 0 : i32
    %c0_i32_1 = arith.constant 0 : i32
    return %c0_i32, %c0_i32_0 : i32, i32
  }
  func.func @transform_7(%arg0: i32) -> (i32, i32) {
    %c0_i32 = arith.constant 0 : i32
    %c0_i32_0 = arith.constant 0 : i32
    return %arg0, %c0_i32 : i32, i32
  }
}

</mosaic_0001>

<bundles_post_ra>
// kernel: tpu_custom_call.1
= control target key start
LH: loop header
LB: loop body
LE: loop exit
PB: predicated region body
PF: predicated region fallthrough
CT: control target
= control target key end

     0   :  { %12 = vsyncpa [#allocation3], 0  ;;  %s1030_s0 = inlined_call_operand.vmem [shape: f32[64,32], index: 0, kind: input, shape index: {}]   ;;  %s1031_s1 = inlined_call_operand.vmem [shape: bf16[32,64], index: 1, kind: input, shape index: {}]   ;;  %s1032_s2 = inlined_call_operand.vmem [shape: f32[1,64], index: 2, kind: input, shape index: {}]   ;;  %s1033_s3 = inlined_call_operand.vmem [shape: bf16[64,64], index: 3, kind: input, shape index: {}]   ;;  %s1034_s4 = inlined_call_operand.vmem [shape: f32[1,64], index: 4, kind: input, shape index: {}]   ;;  %s1035_s5 = inlined_call_operand.vmem [shape: bf16[64,128], index: 5, kind: input, shape index: {}]   ;;  %s1036_s6 = inlined_call_operand.vmem [shape: f32[1,128], index: 6, kind: input, shape index: {}]   ;;  %s1037_s7 = inlined_call_operand.hbm [shape: f32[64,128], index: 7, kind: output, shape index: {}]  }
   0x1   :  { %14 = vsyncpa [#allocation3 + $0x1], 0  ;;  %s885_s24 = smov 0   ;;  %s887_s25 = smov 0  }
   0x2   :  { %s889_s26 = smov 0   ;;  %s891_s27 = smov 0  }
   0x3 LB: > { %s906_s28 = sadd.s32 4294967295, %s840_s27   ;;  %s647_s29 = sadd.s32 4294967294, %s840_s27   ;;  %s840_s27 = sphi %s891_s27, %s1043_s27   ;;  %s836_s26 = sphi %s889_s26, %s1042_s26   ;;  %s832_s25 = sphi %s887_s25, %s1041_s25   ;;  %s828_s24 = sphi %s885_s24, %s1040_s24  }
   0x4   : > { %s910_s30 = sadd.s32 1, %s840_s27   ;;  %s179_s8 = sadd.s32 1, %s836_s26 }
   0x5   : > { %s176_s9 = ssub.s32 %s840_s27, %s910_s30  ;;  %p189_p0 = scmp.ne.s32.totalorder %s836_s26, %s832_s25 }
   0x6   : > { %p177_p1 = scmp.eq.s32.totalorder %s176_s9, 0  ;;  %p190_p2 = scmp.eq.s32.totalorder %s906_s28, 1 }
   0x7   : > { %p195_p3 = scmp.ne.s32.totalorder %s832_s25, %s828_s24  ;;  %p196_p4 = scmp.eq.s32.totalorder %s647_s29, 1 }
   0x8   : > { %s921_s10 = scalar_select %p177_p1, %s836_s26, %s179_s8  }
   0x9   : > { %p923_p5 = por %p190_p2, %p189_p0  ;;  %p927_p6 = por %p196_p4, %p195_p3 }
   0xa   : > { %p650_p7 = scmp.ge.s32.totalorder %s840_s27, 1  ;;  %p241_p8 = scmp.lt.s32.totalorder %s840_s27, 3 }
   0xc   : > { %p242_p9 = pnand %p650_p7, %p241_p8 }
   0xd   : > { %v768_v0 = vld [vmem:[%s1031_s1] sm:$0xff] (!%p242_p9)   ;;  %s652_s15 = sshll.u32 (!%p242_p9), %s906_s28, 2  ;;  %v769_v1 = vld [vmem:[%s1031_s1 + $0x8] sm:$0xff] (!%p242_p9)   ;;  %vm310_vm0 = vcmask (!%p242_p9), 261120   ;;  %v772_v10 = vld [vmem:[%s1033_s3 + $0x10] sm:$0xff] (!%p242_p9)   ;;  %vm411_vm1 = vcmask (!%p242_p9), 523264  }
   0xe   : > { %245 = sbr.rel (%p242_p9) target bundleno = 704 (0x2c0), region = 48  ;;  %p274_p10 = scmp.lt.s32.totalorder (!%p242_p9), %s652_s15, 7  ;;  %695 = vmatprep.subr.bf16.mxu0 (!%p242_p9), %v768_v0  ;;  %v770_v2 = vld [vmem:[%s1033_s3] sm:$0xff] (!%p242_p9)   ;;  %v771_v3 = vld [vmem:[%s1033_s3 + $0x8] sm:$0xff] (!%p242_p9)   ;;  %v773_v11 = vld [vmem:[%s1033_s3 + $0x18] sm:$0xff] (!%p242_p9)  }
   0xf   : > { %696 = vmatpush3.bf16.msra.mxu0 (!%p242_p9), %v768_v0  ;;  %703 = vmatprep.subr.bf16.mxu1 (!%p242_p9), %v770_v2  ;;  %v774_v12 = vld [vmem:[%s1035_s5] sm:$0xff] (!%p242_p9)   ;;  %v775_v13 = vld [vmem:[%s1035_s5 + $0x8] sm:$0xff] (!%p242_p9)   ;;  %v776_v29 = vld [vmem:[%s1035_s5 + $0x10] sm:$0xff] (!%p242_p9)   ;;  %s270_s14 = sand.u32 (!%p242_p9), 1, %s832_s25   ;;  %s678_s20 = sshll.u32 (!%p242_p9), %s906_s28, 9 }
  0x10   : > { %697 = vmatprep.subr.bf16.mxu0 (!%p242_p9), %v769_v1  ;;  %704 = vmatpush3.bf16.msra.mxu1 (!%p242_p9), %v770_v2  ;;  %v654_v14 = vld [vmem:[%s1032_s2] ss:$0 sm:$0xff] (!%p242_p9)  ;;  %v777_v30 = vld [vmem:[%s1035_s5 + $0x18] sm:$0xff] (!%p242_p9)   ;;  %s987_s23 = scalar_lea.hbm (!%p242_p9), %s1037_s7, %s678_s20  ;;  %s989_s28 = scalar_lea.sflag (!%p242_p9), [#allocation3], %s270_s14 }
  0x11   : > { %705 = vmatprep.subr.bf16.mxu1 (!%p242_p9), %v771_v3  ;;  %v659_v31 = vld [vmem:[%s1034_s4] ss:$0 sm:$0xff] (!%p242_p9) }
  0x12   : > { %v666_v46 = vld [vmem:[%s1036_s6] ss:$0 sm:$0xff] (!%p242_p9) }
  0x13   : > { %698 = vmatpush3.bf16.msra.mxu0 (!%p242_p9), %v769_v1 }
  0x14   : > { %706 = vmatpush3.bf16.msra.mxu1 (!%p242_p9), %v771_v3  ;;  %715 = vmatprep.subr.bf16.mxu0 (!%p242_p9), %v774_v12 }
  0x15   : > { %s1045_s15 = smov (!%p274_p10, %s652_s15), 7  ;;  %707 = vmatprep.subr.bf16.mxu1 %v772_v10 }
  0x16   : > { %s653_s22 = sshll.u32 %s1045_s15, 3  ;;  %s651_s15 = sshll.u32 %s270_s14, 5 }
  0x17   : > { %s277_s8 = scalar_lea.vmem %s1030_s0, %s653_s22  ;;  %s272_s18 = scalar_lea.vmem [#allocation2], %s651_s15 }
  0x18   : > { %v281_v4 = vld [vmem:[%s277_s8] sm:$0xff]  ;;  %v282_v5 = vld [vmem:[%s277_s8 + $0x8] sm:$0xff]  ;;  %v283_v6 = vld [vmem:[%s277_s8 + $0x10] sm:$0xff]  ;;  %708 = vmatpush3.bf16.msra.mxu1 %v772_v10  ;;  %s585_s19 = sshll.u32 %s272_s18, 4  ;;  %s982_s19 = int_to_ptr.vmem [resolvable:$true] %s585_s19 }
  0x19   : > { %v285_v7 = vpack.c.bf16 %v282_v5, %v281_v4  ;;  %v284_v8 = vld [vmem:[%s277_s8 + $0x18] sm:$0xff]  ;;  %709 = vmatprep.subr.bf16.mxu1 %v773_v11  ;;  %s778_s29 = scalar_lea.vmem %s982_s19, 512  ;;  %s842_s8 = smov [#allocation2]  }
  0x1a   : > { %v286_v9 = vpack.c.bf16 %v284_v8, %v283_v6  ;;  %p779_p11 = scmp.ne.s32.totalorder %s982_s19, %s778_s29  ;;  %s782_s9 = sshll.u32 %s842_s8, 4  ;;  %s783_s9 = int_to_ptr.vmem [resolvable:$false] %s782_s9 }
  0x1b   : > { %699 = vmatprep.mubr.msk.bf16.mxu0 %vm310_vm0, %v285_v7  ;;  %s784_s13 = scalar_lea.vmem %s783_s9, 1024  ;;  %p785_p0 = scmp.lt.s32.totalorder %s982_s19, %s783_s9 }
  0x1c   : > { %700 = vmatmul.mubr.msk.bf16.vlgmr.msra.gmra.mrb[0].mxu0 %vm310_vm0, %v286_v9  ;;  %710 = vmatpush3.bf16.msra.mxu1 %v773_v11  ;;  %p780_p12 = pnand %p779_p11, %p923_p5  ;;  %p786_p1 = scmp.lt.s32.totalorder %s784_s13, %s778_s29 }
  0x1d   : > { %716 = vmatpush3.bf16.msra.mxu0 %v774_v12 }
  0x1e   : > { %717 = vmatprep.subr.bf16.mxu0 %v775_v13  ;;  %p781_p13 = pneg %p780_p12  ;;  %p787_p2 = por %p786_p1, %p785_p0 }
  0x20   : > { %p788_p3 = pnand %p787_p2, %p781_p13 }
  0x21   : > { %718 = vmatpush3.bf16.msra.mxu0 %v775_v13 }
  0x22   : > { %719 = vmatprep.subr.bf16.mxu0 %v776_v29 }
  0x25   : > { %720 = vmatpush3.bf16.msra.mxu0 %v776_v29 }
  0x26   : > { %721 = vmatprep.subr.bf16.mxu0 %v777_v30 }
  0x29   : > { %722 = vmatpush3.bf16.msra.mxu0 %v777_v30 }
  0xef   : > { %v701_v15 = vpop.f32.mrb[0].mxu0 }
  0xf0   : > { %v360_v16 = vadd.f32 %v701_v15, %v654_v14  ;;  %v351_v17 = vpop.f32.mrb[1].mxu0 }
  0xf1   : > { %v352_v18 = vadd.f32 %v654_v14, %v351_v17  ;;  %v702_v19 = vpop.f32.mrb[2].mxu0 }
  0xf2   : > { %v363_v20 = vadd.f32 %v702_v19, %v654_v14  ;;  %v354_v21 = vpop.f32.mrb[3].mxu0  ;;  %v368_v23 = vmax.f32 %v360_v16, 0.0 }
  0xf3   : > { %v355_v22 = vadd.f32 %v654_v14, %v354_v21  ;;  %v366_v25 = vmax.f32 %v352_v18, 0.0 }
  0xf4   : > { %v369_v24 = vmax.f32 %v363_v20, 0.0 }
  0xf5   : > { %v367_v26 = vmax.f32 %v355_v22, 0.0 }
  0xf6   : > { %v371_v27 = vpack.c.bf16 %v369_v24, %v368_v23 }
  0xf7   : > { %v370_v28 = vpack.c.bf16 %v367_v26, %v366_v25 }
  0xf9   : > { %711 = vmatprep.mubr.msk.bf16.mxu1 %vm411_vm1, %v370_v28 }
  0xfa   : > { %712 = vmatmul.mubr.msk.bf16.vlgmr.msra.gmra.mrb[0].mxu1 %vm411_vm1, %v371_v27 }
 0x1cd   : > { %v713_v32 = vpop.f32.mrb[0].mxu1 }
 0x1ce   : > { %v461_v33 = vadd.f32 %v713_v32, %v659_v31  ;;  %v452_v34 = vpop.f32.mrb[1].mxu1 }
 0x1cf   : > { %v453_v35 = vadd.f32 %v659_v31, %v452_v34  ;;  %v714_v36 = vpop.f32.mrb[2].mxu1 }
 0x1d0   : > { %v464_v37 = vadd.f32 %v714_v36, %v659_v31  ;;  %v455_v38 = vpop.f32.mrb[3].mxu1  ;;  %v469_v40 = vmax.f32 %v461_v33, 0.0 }
 0x1d1   : > { %v456_v39 = vadd.f32 %v659_v31, %v455_v38  ;;  %v467_v42 = vmax.f32 %v453_v35, 0.0 }
 0x1d2   : > { %v470_v41 = vmax.f32 %v464_v37, 0.0 }
 0x1d3   : > { %v468_v43 = vmax.f32 %v456_v39, 0.0 }
 0x1d4   : > { %v472_v44 = vpack.c.bf16 %v470_v41, %v469_v40 }
 0x1d5   : > { %v471_v45 = vpack.c.bf16 %v468_v43, %v467_v42 }
 0x1d7   : > { %723 = vmatprep.mubr.msk.bf16.mxu0 %vm411_vm1, %v471_v45 }
 0x1d8   : > { %724 = vmatmul.mubr.msk.bf16.vlgmr.msra.gmra.mrb[4].mxu0 %vm411_vm1, %v472_v44 }
 0x2ab   : > { %v725_v47 = vpop.f32.mrb[4].mxu0 }
 0x2ac   : > { %v561_v48 = vadd.f32 %v725_v47, %v666_v46  ;;  %v552_v49 = vpop.f32.mrb[5].mxu0 }
 0x2ad   : > { %v553_v50 = vadd.f32 %v666_v46, %v552_v49  ;;  %v726_v51 = vpop.f32.mrb[6].mxu0 }
 0x2ae   : > { %569 = vst [vmem:[%s272_s18 + $0x10] sm:$0xff] %v561_v48  ;;  %v564_v52 = vadd.f32 %v726_v51, %v666_v46  ;;  %v555_v53 = vpop.f32.mrb[7].mxu0 }
 0x2af   : > { %567 = vst [vmem:[%s272_s18] sm:$0xff] %v553_v50  ;;  %v556_v54 = vadd.f32 %v666_v46, %v555_v53 }
 0x2b0   : > { %570 = vst [vmem:[%s272_s18 + $0x18] sm:$0xff] %v564_v52 }
 0x2b1   : > { %568 = vst [vmem:[%s272_s18 + $0x8] sm:$0xff] %v556_v54 }
 0x2b2   : > { %791 = shalt.err (!%p788_p3)
}
 0x2b3   : > { %s792_s14 = scalar_lea.hbm %s987_s23, 512  ;;  %s796_s17 = scalar_lea.hbm %s1037_s7, 1024 }
 0x2b4   : > { %p793_p4 = scmp.ne.s32.totalorder %s987_s23, %s792_s14  ;;  %p797_p9 = scmp.lt.u32.totalorder %s987_s23, %s1037_s7 }
 0x2b5   : > { %p798_p10 = scmp.lt.u32.totalorder %s796_s17, %s792_s14  ;;  %p800_p12 = scmp.lt.u32.totalorder %s792_s14, %s987_s23 }
 0x2b6   : > { %p794_p7 = pnand %p793_p4, %p923_p5 }
 0x2b7   : > { %p799_p11 = por %p798_p10, %p797_p9 }
 0x2b8   : > { %p795_p8 = pneg %p794_p7 }
 0x2b9   : > { %p801_p13 = por %p800_p12, %p799_p11 }
 0x2bb   : > { %p802_p0 = pnand %p801_p13, %p795_p8 }
 0x2bd   : > { %805 = shalt.err (!%p802_p0)
}
 0x2be   : > { %s843_s21 = smov 128   ;;  %s844_s22 = smov 8  }
 0x2bf   : > { %727 = dma.vmem_to_hbm [thread:$0]  (%p923_p5), %s982_s19, 512, %s987_s23, %s989_s28, %s843_s21, %s843_s21, %s844_s22  }
 0x2c0 PF: > { %p733_p1 = scmp.ge.s32.totalorder %s840_s27, 2  ;;  %s600_s29 = sand.u32 1, %s828_s24  }
 0x2c1   : > { %s601_s8 = scalar_lea.sflag [#allocation3], %s600_s29 }
 0x2c2   : > { %p730_p2 = pnand %p733_p1, %p927_p6 }
 0x2c4   : > { %823 = dma.done.wait (!%p730_p2), %s601_s8, 512  }
 0x2c5   : > { %825 = vsyncadd (!%p730_p2), %s601_s8, 4294966784  ;;  %p17_p3 = scmp.ge.s32.totalorder %s910_s30, 4   ;;  %s1040_s24 = smov %s832_s25 }
 0x2c6   : > { %s1041_s25 = smov %s836_s26  ;;  %s1042_s26 = smov %s921_s10 }
 0x2c7   : > { %s1043_s27 = smov %s910_s30  ;;  %19 = sbr.rel (!%p17_p3) target bundleno = 3 (0x3), region = 83 }
 0x2ce   :  { %606 = vsyncpa [#allocation3], 1 }
 0x2cf   :  { %608 = vsyncpa [#allocation3 + $0x1], 1 }

</bundles_post_ra>
